<compile_context>
chip_gen: v7x
topology: tpu7x:2x2x1
jax: 0.10.0
libtpu: 0.0.40
codegen_flags: <defaults>
</compile_context>

<pallas_src>
import jax
import jax.numpy as jnp
from jax.experimental import pallas as pl
from jax.experimental.pallas import tpu as pltpu

IN_DIM = 22 * 6          # 132
H0, H1, H2, OUT = 560, 256, 128, 10

# Tile-aligned (8,128) padded dims.
K_PAD   = 256            # 132 -> 256  (fc0 contraction, lane dim of x)
H0_PAD  = 640            # 560 -> 640  (5 * 128)
H1_PAD  = 256
H2_PAD  = 128
OUT_PAD = 128            # 10 -> 128 so the output store is a full unmasked vst

TM_MAX = 512             # batch rows per grid step (comfortably inside scoped VMEM)


def _round_up(n, m):
    return ((n + m - 1) // m) * m


def dnn_kernel(x_ref, w0_ref, b0_ref, w1_ref, b1_ref, w2_ref, b2_ref,
               w3_ref, b3_ref, o_ref):
    # Fused 4-layer MLP on one (TM, K_PAD) batch tile. Weights stay VMEM-resident
    # across grid steps (constant index_maps). bf16 MXU inputs, f32 accumulation,
    # f32 bias + ReLU epilogue, bf16 hand-off between layers.
    h = jnp.dot(x_ref[...], w0_ref[...], preferred_element_type=jnp.float32)
    h = jnp.maximum(h + b0_ref[...], 0.0).astype(jnp.bfloat16)

    h = jnp.dot(h, w1_ref[...], preferred_element_type=jnp.float32)
    h = jnp.maximum(h + b1_ref[...], 0.0).astype(jnp.bfloat16)

    h = jnp.dot(h, w2_ref[...], preferred_element_type=jnp.float32)
    h = jnp.maximum(h + b2_ref[...], 0.0).astype(jnp.bfloat16)

    h = jnp.dot(h, w3_ref[...], preferred_element_type=jnp.float32)
    o_ref[...] = (h + b3_ref[...]).astype(o_ref.dtype)


def pad_and_cast_params(params):
    """Zero-pad (in,out)-layout f32 params to tile-aligned shapes; weights -> bf16."""
    (w0, b0), (w1, b1), (w2, b2), (w3, b3) = params

    def pad_w(w, rows, cols):
        return jnp.zeros((rows, cols), w.dtype).at[:w.shape[0], :w.shape[1]].set(w)

    def pad_b(b, cols):
        b = b.reshape(1, -1)
        return jnp.zeros((1, cols), b.dtype).at[:, :b.shape[1]].set(b)

    w0p = pad_w(w0, K_PAD, H0_PAD).astype(jnp.bfloat16)
    w1p = pad_w(w1, H0_PAD, H1_PAD).astype(jnp.bfloat16)
    w2p = pad_w(w2, H1_PAD, H2_PAD).astype(jnp.bfloat16)
    w3p = pad_w(w3, H2_PAD, OUT_PAD).astype(jnp.bfloat16)
    # Biases stay f32 (epilogue add/ReLU runs in f32 on the VPU).
    return (w0p, pad_b(b0, H0_PAD), w1p, pad_b(b1, H1_PAD),
            w2p, pad_b(b2, H2_PAD), w3p, pad_b(b3, OUT_PAD))


@jax.jit
def dnn_forward(x, params):
    """x: any shape that flattens to (-1, 132), matching x.view(-1, 22*6)."""
    x2d = x.reshape(-1, IN_DIM)
    B = x2d.shape[0]

    # Batch tile: multiple of 8 sublanes, capped at TM_MAX; pad B up to a tile multiple.
    TM = max(8, min(TM_MAX, _round_up(B, 8)))
    B_pad = _round_up(B, TM)
    grid = (B_pad // TM,)

    xp = jnp.zeros((B_pad, K_PAD), jnp.bfloat16)
    xp = xp.at[:B, :IN_DIM].set(x2d.astype(jnp.bfloat16))

    w0, b0, w1, b1, w2, b2, w3, b3 = pad_and_cast_params(params)

    def const(shape):  # whole array, same block every grid step -> DMA'd once
        return pl.BlockSpec(shape, lambda i: (0, 0))

    in_specs = [
        pl.BlockSpec((TM, K_PAD), lambda i: (i, 0)),     # x: streamed per batch tile
        const((K_PAD, H0_PAD)),  const((1, H0_PAD)),
        const((H0_PAD, H1_PAD)), const((1, H1_PAD)),
        const((H1_PAD, H2_PAD)), const((1, H2_PAD)),
        const((H2_PAD, OUT_PAD)), const((1, OUT_PAD)),
    ]
    out_specs = pl.BlockSpec((TM, OUT_PAD), lambda i: (i, 0))

    weight_elems = (K_PAD * H0_PAD + H0_PAD * H1_PAD
                    + H1_PAD * H2_PAD + H2_PAD * OUT_PAD)
    flops = 2 * B_pad * weight_elems
    bytes_accessed = (B_pad * K_PAD * 2            # x (bf16)
                      + B_pad * OUT_PAD * 4        # out (f32)
                      + weight_elems * 2           # bf16 weights
                      + (H0_PAD + H1_PAD + H2_PAD + OUT_PAD) * 4)  # f32 biases

    out = pl.pallas_call(
        dnn_kernel,
        out_shape=jax.ShapeDtypeStruct((B_pad, OUT_PAD), jnp.float32),
        grid=grid,
        in_specs=in_specs,
        out_specs=out_specs,
        compiler_params=pltpu.CompilerParams(
            dimension_semantics=("parallel",)),
        cost_estimate=pl.CostEstimate(
            flops=flops, transcendentals=0, bytes_accessed=bytes_accessed),
    )(xp, w0, b0, w1, b1, w2, b2, w3, b3)

    return out[:B, :OUT]


def init_params(key):
    """Deterministic synthetic parameters with the shapes implied by DNN.__init__,
    stored as (in_features, out_features) so the kernel computes x @ W + b."""
    dims = [(IN_DIM, H0), (H0, H1), (H1, H2), (H2, OUT)]
    params = []
    for i, (fan_in, fan_out) in enumerate(dims):
        kw, kb = jax.random.split(jax.random.fold_in(key, i))
        scale = 1.0 / jnp.sqrt(jnp.float32(fan_in))
        w = jax.random.uniform(kw, (fan_in, fan_out), jnp.float32, -scale, scale)
        b = jax.random.uniform(kb, (1, fan_out), jnp.float32, -scale, scale)
        params.append((w, b))
    return params


def reference_forward(x, params):
    """Plain-JAX reference using the same bf16-weight / f32-accumulate recipe."""
    h = x.reshape(-1, IN_DIM).astype(jnp.bfloat16)
    (w0, b0), (w1, b1), (w2, b2), (w3, b3) = params

    def lin(h, w, b):
        return jnp.dot(h, w.astype(jnp.bfloat16),
                       preferred_element_type=jnp.float32) + b.reshape(1, -1)

    h = jnp.maximum(lin(h, w0, b0), 0.0).astype(jnp.bfloat16)
    h = jnp.maximum(lin(h, w1, b1), 0.0).astype(jnp.bfloat16)
    h = jnp.maximum(lin(h, w2, b2), 0.0).astype(jnp.bfloat16)
    return lin(h, w3, b3)


if __name__ == "__main__":
    key = jax.random.PRNGKey(0)
    k_x, k_p = jax.random.split(key)

    # Small batch; input shaped (B, 22, 6) — forward flattens it to (B, 132).
    x = jax.random.normal(k_x, (8, 22, 6), dtype=jnp.float32)
    params = init_params(k_p)

    out = jax.block_until_ready(dnn_forward(x, params))
    ref = reference_forward(x, params)

    assert out.shape == (8, OUT), out.shape
    assert jnp.allclose(out, ref, atol=2e-2, rtol=2e-2), \
        float(jnp.max(jnp.abs(out - ref)))

    print("KERNEL_OK")
</pallas_src>

<mosaic_0001>
module attributes {stable_mosaic.version = 11 : i64} {
  func.func @dnn_kernel(%arg0: i32, %arg1: memref<8x256xbf16, #tpu.memory_space<vmem>>, %arg2: memref<256x640xbf16, #tpu.memory_space<vmem>>, %arg3: memref<1x640xf32, #tpu.memory_space<vmem>>, %arg4: memref<640x256xbf16, #tpu.memory_space<vmem>>, %arg5: memref<1x256xf32, #tpu.memory_space<vmem>>, %arg6: memref<256x128xbf16, #tpu.memory_space<vmem>>, %arg7: memref<1x128xf32, #tpu.memory_space<vmem>>, %arg8: memref<128x128xbf16, #tpu.memory_space<vmem>>, %arg9: memref<1x128xf32, #tpu.memory_space<vmem>>, %arg10: memref<8x128xf32, #tpu.memory_space<vmem>>) attributes {dimension_semantics = [#tpu.dimension_semantics<parallel>], iteration_bounds = array<i64: 1>, scalar_prefetch = 0 : i64, scratch_operands = 0 : i64, tpu.core_type = #tpu.core_type<tc>, window_params = [{transform_indices = @transform_0, window_bounds = array<i64: 8, 256>}, {pipeline_mode = #tpu.pipeline_mode<synchronous>, transform_indices = @transform_1, window_bounds = array<i64: 256, 640>}, {pipeline_mode = #tpu.pipeline_mode<synchronous>, transform_indices = @transform_2, window_bounds = array<i64: 1, 640>}, {pipeline_mode = #tpu.pipeline_mode<synchronous>, transform_indices = @transform_3, window_bounds = array<i64: 640, 256>}, {pipeline_mode = #tpu.pipeline_mode<synchronous>, transform_indices = @transform_4, window_bounds = array<i64: 1, 256>}, {pipeline_mode = #tpu.pipeline_mode<synchronous>, transform_indices = @transform_5, window_bounds = array<i64: 256, 128>}, {pipeline_mode = #tpu.pipeline_mode<synchronous>, transform_indices = @transform_6, window_bounds = array<i64: 1, 128>}, {pipeline_mode = #tpu.pipeline_mode<synchronous>, transform_indices = @transform_7, window_bounds = array<i64: 128, 128>}, {pipeline_mode = #tpu.pipeline_mode<synchronous>, transform_indices = @transform_8, window_bounds = array<i64: 1, 128>}, {transform_indices = @transform_9, window_bounds = array<i64: 8, 128>}]} {
    %c0 = arith.constant 0 : index
    %c0_0 = arith.constant 0 : index
    %0 = vector.load %arg1[%c0, %c0_0] : memref<8x256xbf16, #tpu.memory_space<vmem>>, vector<8x256xbf16>
    %c0_1 = arith.constant 0 : index
    %c0_2 = arith.constant 0 : index
    %1 = vector.load %arg2[%c0_1, %c0_2] : memref<256x640xbf16, #tpu.memory_space<vmem>>, vector<256x640xbf16>
    %cst = arith.constant dense<0.000000e+00> : vector<8x640xf32>
    %2 = tpu.matmul %0, %1, %cst {dimension_numbers = #tpu.dot_dimension_numbers<[1], [0], [0], [1], [0, 0, 1, 1], [], []>} : vector<8x256xbf16>, vector<256x640xbf16>, vector<8x640xf32> -> vector<8x640xf32>
    %c0_3 = arith.constant 0 : index
    %c0_4 = arith.constant 0 : index
    %3 = vector.load %arg3[%c0_3, %c0_4] : memref<1x640xf32, #tpu.memory_space<vmem>>, vector<1x640xf32>
    %4 = vector.broadcast %3 : vector<1x640xf32> to vector<8x640xf32>
    %5 = arith.addf %2, %4 : vector<8x640xf32>
    %cst_5 = arith.constant 0.000000e+00 : f32
    %6 = vector.broadcast %cst_5 : f32 to vector<8x640xf32>
    %7 = arith.maximumf %5, %6 : vector<8x640xf32>
    %8 = arith.truncf %7 : vector<8x640xf32> to vector<8x640xbf16>
    %c0_6 = arith.constant 0 : index
    %c0_7 = arith.constant 0 : index
    %9 = vector.load %arg4[%c0_6, %c0_7] : memref<640x256xbf16, #tpu.memory_space<vmem>>, vector<640x256xbf16>
    %cst_8 = arith.constant dense<0.000000e+00> : vector<8x256xf32>
    %10 = tpu.matmul %8, %9, %cst_8 {dimension_numbers = #tpu.dot_dimension_numbers<[1], [0], [0], [1], [0, 0, 1, 1], [], []>} : vector<8x640xbf16>, vector<640x256xbf16>, vector<8x256xf32> -> vector<8x256xf32>
    %c0_9 = arith.constant 0 : index
    %c0_10 = arith.constant 0 : index
    %11 = vector.load %arg5[%c0_9, %c0_10] : memref<1x256xf32, #tpu.memory_space<vmem>>, vector<1x256xf32>
    %12 = vector.broadcast %11 : vector<1x256xf32> to vector<8x256xf32>
    %13 = arith.addf %10, %12 : vector<8x256xf32>
    %cst_11 = arith.constant 0.000000e+00 : f32
    %14 = vector.broadcast %cst_11 : f32 to vector<8x256xf32>
    %15 = arith.maximumf %13, %14 : vector<8x256xf32>
    %16 = arith.truncf %15 : vector<8x256xf32> to vector<8x256xbf16>
    %c0_12 = arith.constant 0 : index
    %c0_13 = arith.constant 0 : index
    %17 = vector.load %arg6[%c0_12, %c0_13] : memref<256x128xbf16, #tpu.memory_space<vmem>>, vector<256x128xbf16>
    %cst_14 = arith.constant dense<0.000000e+00> : vector<8x128xf32>
    %18 = tpu.matmul %16, %17, %cst_14 {dimension_numbers = #tpu.dot_dimension_numbers<[1], [0], [0], [1], [0, 0, 1, 1], [], []>} : vector<8x256xbf16>, vector<256x128xbf16>, vector<8x128xf32> -> vector<8x128xf32>
    %c0_15 = arith.constant 0 : index
    %c0_16 = arith.constant 0 : index
    %19 = vector.load %arg7[%c0_15, %c0_16] : memref<1x128xf32, #tpu.memory_space<vmem>>, vector<1x128xf32>
    %20 = vector.broadcast %19 : vector<1x128xf32> to vector<8x128xf32>
    %21 = arith.addf %18, %20 : vector<8x128xf32>
    %cst_17 = arith.constant 0.000000e+00 : f32
    %22 = vector.broadcast %cst_17 : f32 to vector<8x128xf32>
    %23 = arith.maximumf %21, %22 : vector<8x128xf32>
    %24 = arith.truncf %23 : vector<8x128xf32> to vector<8x128xbf16>
    %c0_18 = arith.constant 0 : index
    %c0_19 = arith.constant 0 : index
    %25 = vector.load %arg8[%c0_18, %c0_19] : memref<128x128xbf16, #tpu.memory_space<vmem>>, vector<128x128xbf16>
    %cst_20 = arith.constant dense<0.000000e+00> : vector<8x128xf32>
    %26 = tpu.matmul %24, %25, %cst_20 {dimension_numbers = #tpu.dot_dimension_numbers<[1], [0], [0], [1], [0, 0, 1, 1], [], []>} : vector<8x128xbf16>, vector<128x128xbf16>, vector<8x128xf32> -> vector<8x128xf32>
    %c0_21 = arith.constant 0 : index
    %c0_22 = arith.constant 0 : index
    %27 = vector.load %arg9[%c0_21, %c0_22] : memref<1x128xf32, #tpu.memory_space<vmem>>, vector<1x128xf32>
    %28 = vector.broadcast %27 : vector<1x128xf32> to vector<8x128xf32>
    %29 = arith.addf %26, %28 : vector<8x128xf32>
    %c0_23 = arith.constant 0 : index
    %c0_24 = arith.constant 0 : index
    %30 = vector.load %arg10[%c0_23, %c0_24] : memref<8x128xf32, #tpu.memory_space<vmem>>, vector<8x128xf32>
    tpu.vector_store %arg10[%c0_23, %c0_24], %29 {strides = array<i32>} : memref<8x128xf32, #tpu.memory_space<vmem>>, vector<8x128xf32>,
    return
  }
  func.func @transform_0(%arg0: i32) -> (i32, i32) {
    %c0_i32 = arith.constant 0 : i32
    %c0_i32_0 = arith.constant 0 : i32
    return %arg0, %c0_i32 : i32, i32
  }
  func.func @transform_1(%arg0: i32) -> (i32, i32) {
    %c0_i32 = arith.constant 0 : i32
    %c0_i32_0 = arith.constant 0 : i32
    %c0_i32_1 = arith.constant 0 : i32
    return %c0_i32, %c0_i32_0 : i32, i32
  }
  func.func @transform_2(%arg0: i32) -> (i32, i32) {
    %c0_i32 = arith.constant 0 : i32
    %c0_i32_0 = arith.constant 0 : i32
    %c0_i32_1 = arith.constant 0 : i32
    return %c0_i32, %c0_i32_0 : i32, i32
  }
  func.func @transform_3(%arg0: i32) -> (i32, i32) {
    %c0_i32 = arith.constant 0 : i32
    %c0_i32_0 = arith.constant 0 : i32
    %c0_i32_1 = arith.constant 0 : i32
    return %c0_i32, %c0_i32_0 : i32, i32
  }
  func.func @transform_4(%arg0: i32) -> (i32, i32) {
    %c0_i32 = arith.constant 0 : i32
    %c0_i32_0 = arith.constant 0 : i32
    %c0_i32_1 = arith.constant 0 : i32
    return %c0_i32, %c0_i32_0 : i32, i32
  }
  func.func @transform_5(%arg0: i32) -> (i32, i32) {
    %c0_i32 = arith.constant 0 : i32
    %c0_i32_0 = arith.constant 0 : i32
    %c0_i32_1 = arith.constant 0 : i32
    return %c0_i32, %c0_i32_0 : i32, i32
  }
  func.func @transform_6(%arg0: i32) -> (i32, i32) {
    %c0_i32 = arith.constant 0 : i32
    %c0_i32_0 = arith.constant 0 : i32
    %c0_i32_1 = arith.constant 0 : i32
    return %c0_i32, %c0_i32_0 : i32, i32
  }
  func.func @transform_7(%arg0: i32) -> (i32, i32) {
    %c0_i32 = arith.constant 0 : i32
    %c0_i32_0 = arith.constant 0 : i32
    %c0_i32_1 = arith.constant 0 : i32
    return %c0_i32, %c0_i32_0 : i32, i32
  }
  func.func @transform_8(%arg0: i32) -> (i32, i32) {
    %c0_i32 = arith.constant 0 : i32
    %c0_i32_0 = arith.constant 0 : i32
    %c0_i32_1 = arith.constant 0 : i32
    return %c0_i32, %c0_i32_0 : i32, i32
  }
  func.func @transform_9(%arg0: i32) -> (i32, i32) {
    %c0_i32 = arith.constant 0 : i32
    %c0_i32_0 = arith.constant 0 : i32
    return %arg0, %c0_i32 : i32, i32
  }
}

</mosaic_0001>

<bundles_post_ra>
// kernel: dnn_forward.1
= control target key start
LH: loop header
LB: loop body
LE: loop exit
PB: predicated region body
PF: predicated region fallthrough
CT: control target
= control target key end

     0   :  { %s2864_s0 = inlined_call_operand.vmem [shape: bf16[8,256], index: 0, kind: input, shape index: {}]   ;;  %s2865_s1 = inlined_call_operand.vmem [shape: bf16[256,640], index: 1, kind: input, shape index: {}]   ;;  %s2866_s2 = inlined_call_operand.vmem [shape: f32[1,640], index: 2, kind: input, shape index: {}]   ;;  %s2867_s3 = inlined_call_operand.vmem [shape: bf16[640,256], index: 3, kind: input, shape index: {}]   ;;  %s2868_s4 = inlined_call_operand.vmem [shape: f32[1,256], index: 4, kind: input, shape index: {}]   ;;  %s2869_s5 = inlined_call_operand.vmem [shape: bf16[256,128], index: 5, kind: input, shape index: {}]   ;;  %s2870_s6 = inlined_call_operand.vmem [shape: f32[1,128], index: 6, kind: input, shape index: {}]   ;;  %s2871_s7 = inlined_call_operand.vmem [shape: bf16[128,128], index: 7, kind: input, shape index: {}]   ;;  %s2872_s8 = inlined_call_operand.vmem [shape: f32[1,128], index: 8, kind: input, shape index: {}]   ;;  %s2873_s9 = inlined_call_operand.hbm [shape: f32[8,128], index: 9, kind: output, shape index: {}]  }
   0x1   :  { %v1908_v0 = vld [vmem:[%s2865_s1 + $0x4] ss:$20 sps:$4 sm:$0xff]   ;;  %v1910_v1 = vld [vmem:[%s2865_s1] ss:$20 sps:$4 sm:$0xff]   ;;  %v1913_v3 = vld [vmem:[%s2865_s1 + $0x28] ss:$20 sps:$4 sm:$0xff]  }
   0x2   :  { %581 = vmatprep.subr.bf16.mxu0 %v1908_v0  ;;  %v1911_v2 = vld [vmem:[%s2865_s1 + $0x2c] ss:$20 sps:$4 sm:$0xff]   ;;  %v1914_v4 = vld [vmem:[%s2865_s1 + $0x54] ss:$20 sps:$4 sm:$0xff]   ;;  %v1916_v5 = vld [vmem:[%s2865_s1 + $0x50] ss:$20 sps:$4 sm:$0xff]  }
   0x3   :  { %582 = vmatpush1.bf16.msra.mxu0 %v1910_v1  ;;  %v1917_v6 = vld [vmem:[%s2865_s1 + $0x7c] ss:$20 sps:$4 sm:$0xff]   ;;  %v1919_v7 = vld [vmem:[%s2865_s1 + $0x78] ss:$20 sps:$4 sm:$0xff]   ;;  %v1922_v9 = vld [vmem:[%s2865_s1 + $0xa0] ss:$20 sps:$4 sm:$0xff]  }
   0x4   :  { %583 = vmatprep.subr.bf16.mxu0 %v1911_v2  ;;  %v1920_v8 = vld [vmem:[%s2865_s1 + $0xa4] ss:$20 sps:$4 sm:$0xff]   ;;  %v1923_v10 = vld [vmem:[%s2865_s1 + $0xcc] ss:$20 sps:$4 sm:$0xff]   ;;  %v1925_v11 = vld [vmem:[%s2865_s1 + $0xc8] ss:$20 sps:$4 sm:$0xff]  }
   0x5   :  { %v1926_v12 = vld [vmem:[%s2865_s1 + $0xf4] ss:$20 sps:$4 sm:$0xff]   ;;  %v1928_v13 = vld [vmem:[%s2865_s1 + $0xf0] ss:$20 sps:$4 sm:$0xff]   ;;  %v1955_v14 = vld [vmem:[%s2865_s1 + $0xc] ss:$20 sps:$4 sm:$0xff]  }
   0x6   :  { %v1929_v15 = vld [vmem:[%s2865_s1 + $0x11c] ss:$20 sps:$4 sm:$0xff]   ;;  %v2298_v17 = vld [vmem:[%s2864_s0] sm:$0xff]  ;;  %622 = vmatprep.subr.bf16.mxu1 %v1955_v14  ;;  %v1961_v19 = vld [vmem:[%s2865_s1 + $0x34] ss:$20 sps:$4 sm:$0xff]  }
   0x7   :  { %584 = vmatpush1.bf16.msra.mxu0 %v1913_v3  ;;  %v1958_v16 = vld [vmem:[%s2865_s1 + $0x8] ss:$20 sps:$4 sm:$0xff]   ;;  %v2302_v18 = vcombine.high %v2298_v17, %v2298_v17  ;;  %v1963_v20 = vld [vmem:[%s2865_s1 + $0x30] ss:$20 sps:$4 sm:$0xff]   ;;  %v1931_v22 = vld [vmem:[%s2865_s1 + $0x118] ss:$20 sps:$4 sm:$0xff]   ;;  %v2425_v58 = vcombine.low %v2298_v17, %v2298_v17 }
   0x8   :  { %585 = vmatprep.subr.bf16.mxu0 %v1914_v4  ;;  %623 = vmatpush1.bf16.msra.mxu1 %v1958_v16  ;;  %v1964_v21 = vld [vmem:[%s2865_s1 + $0x5c] ss:$20 sps:$4 sm:$0xff]   ;;  %v1932_v23 = vld [vmem:[%s2865_s1 + $0x144] ss:$20 sps:$4 sm:$0xff]   ;;  %v1934_v26 = vld [vmem:[%s2865_s1 + $0x140] ss:$20 sps:$4 sm:$0xff]  }
   0x9   :  { %613 = vmatprep.mubr.bf16.mxu0 %v2302_v18  ;;  %624 = vmatprep.subr.bf16.mxu1 %v1961_v19  ;;  %v1966_v24 = vld [vmem:[%s2865_s1 + $0x58] ss:$20 sps:$4 sm:$0xff]   ;;  %v1969_v28 = vld [vmem:[%s2865_s1 + $0x80] ss:$20 sps:$4 sm:$0xff]   ;;  %v1937_v30 = vld [vmem:[%s2865_s1 + $0x168] ss:$20 sps:$4 sm:$0xff]  }
   0xa   :  { %654 = vmatprep.mubr.bf16.mxu1 %v2302_v18  ;;  %v1967_v25 = vld [vmem:[%s2865_s1 + $0x84] ss:$20 sps:$4 sm:$0xff]   ;;  %v1935_v27 = vld [vmem:[%s2865_s1 + $0x16c] ss:$20 sps:$4 sm:$0xff]   ;;  %v1938_v31 = vld [vmem:[%s2865_s1 + $0x194] ss:$20 sps:$4 sm:$0xff]  }
   0xb   :  { %586 = vmatpush1.bf16.msra.mxu0 %v1916_v5  ;;  %v1970_v29 = vld [vmem:[%s2865_s1 + $0xac] ss:$20 sps:$4 sm:$0xff]   ;;  %v1972_v32 = vld [vmem:[%s2865_s1 + $0xa8] ss:$20 sps:$4 sm:$0xff]   ;;  %v1940_v34 = vld [vmem:[%s2865_s1 + $0x190] ss:$20 sps:$4 sm:$0xff]  }
   0xc   :  { %587 = vmatprep.subr.bf16.mxu0 %v1917_v6  ;;  %625 = vmatpush1.bf16.msra.mxu1 %v1963_v20  ;;  %v1973_v33 = vld [vmem:[%s2865_s1 + $0xd4] ss:$20 sps:$4 sm:$0xff]   ;;  %v1941_v35 = vld [vmem:[%s2865_s1 + $0x1bc] ss:$20 sps:$4 sm:$0xff]   ;;  %v1943_v38 = vld [vmem:[%s2865_s1 + $0x1b8] ss:$20 sps:$4 sm:$0xff]  }
   0xd   :  { %626 = vmatprep.subr.bf16.mxu1 %v1964_v21  ;;  %v1975_v36 = vld [vmem:[%s2865_s1 + $0xd0] ss:$20 sps:$4 sm:$0xff]   ;;  %v1978_v40 = vld [vmem:[%s2865_s1 + $0xf8] ss:$20 sps:$4 sm:$0xff]   ;;  %v1946_v42 = vld [vmem:[%s2865_s1 + $0x1e0] ss:$20 sps:$4 sm:$0xff]  }
   0xe   :  { %v1976_v37 = vld [vmem:[%s2865_s1 + $0xfc] ss:$20 sps:$4 sm:$0xff]   ;;  %v1944_v39 = vld [vmem:[%s2865_s1 + $0x1e4] ss:$20 sps:$4 sm:$0xff]   ;;  %v1947_v43 = vld [vmem:[%s2865_s1 + $0x20c] ss:$20 sps:$4 sm:$0xff]  }
   0xf   :  { %588 = vmatpush1.bf16.msra.mxu0 %v1919_v7  ;;  %v1979_v41 = vld [vmem:[%s2865_s1 + $0x124] ss:$20 sps:$4 sm:$0xff]   ;;  %v1981_v44 = vld [vmem:[%s2865_s1 + $0x120] ss:$20 sps:$4 sm:$0xff]   ;;  %v1949_v46 = vld [vmem:[%s2865_s1 + $0x208] ss:$20 sps:$4 sm:$0xff]  }
  0x10   :  { %589 = vmatprep.subr.bf16.mxu0 %v1920_v8  ;;  %627 = vmatpush1.bf16.msra.mxu1 %v1966_v24  ;;  %v1982_v45 = vld [vmem:[%s2865_s1 + $0x14c] ss:$20 sps:$4 sm:$0xff]   ;;  %v1950_v47 = vld [vmem:[%s2865_s1 + $0x234] ss:$20 sps:$4 sm:$0xff]   ;;  %v1952_v50 = vld [vmem:[%s2865_s1 + $0x230] ss:$20 sps:$4 sm:$0xff]  }
  0x11   :  { %628 = vmatprep.subr.bf16.mxu1 %v1967_v25  ;;  %v1985_v48 = vld [vmem:[%s2865_s1 + $0x148] ss:$20 sps:$4 sm:$0xff]   ;;  %v1990_v52 = vld [vmem:[%s2865_s1 + $0x170] ss:$20 sps:$4 sm:$0xff]   ;;  %v1957_v54 = vld [vmem:[%s2865_s1 + $0x258] ss:$20 sps:$4 sm:$0xff]  }
  0x12   :  { %v1987_v49 = vld [vmem:[%s2865_s1 + $0x174] ss:$20 sps:$4 sm:$0xff]   ;;  %v1953_v51 = vld [vmem:[%s2865_s1 + $0x25c] ss:$20 sps:$4 sm:$0xff]   ;;  %v1995_v56 = vld [vmem:[%s2865_s1 + $0x198] ss:$20 sps:$4 sm:$0xff]  }
  0x13   :  { %590 = vmatpush1.bf16.msra.mxu0 %v1922_v9  ;;  %v1992_v53 = vld [vmem:[%s2865_s1 + $0x19c] ss:$20 sps:$4 sm:$0xff]   ;;  %v1997_v57 = vld [vmem:[%s2865_s1 + $0x1c4] ss:$20 sps:$4 sm:$0xff]   ;;  %v2000_v61 = vld [vmem:[%s2865_s1 + $0x1c0] ss:$20 sps:$4 sm:$0xff]  }
  0x14   :  { %591 = vmatprep.subr.bf16.mxu0 %v1923_v10  ;;  %629 = vmatpush1.bf16.msra.mxu1 %v1969_v28  ;;  %v1984_v55 = vld [vmem:[%s2865_s1 + $0x150] ss:$20 sps:$4 sm:$0xff]   ;;  %v1989_v60 = vld [vmem:[%s2865_s1 + $0x178] ss:$20 sps:$4 sm:$0xff]   ;;  %v1994_v0 = vld [vmem:[%s2865_s1 + $0x1a0] ss:$20 sps:$4 sm:$0xff]  }
  0x15   :  { %630 = vmatprep.subr.bf16.mxu1 %v1970_v29  ;;  %v1986_v59 = vld [vmem:[%s2865_s1 + $0x10] ss:$20 sps:$4 sm:$0xff]   ;;  %v2002_v62 = vld [vmem:[%s2865_s1 + $0x1ec] ss:$20 sps:$4 sm:$0xff]   ;;  %v2005_v1 = vld [vmem:[%s2865_s1 + $0x1e8] ss:$20 sps:$4 sm:$0xff]  }
  0x16   :  { %v1991_v63 = vld [vmem:[%s2865_s1 + $0x38] ss:$20 sps:$4 sm:$0xff]   ;;  %v2007_v2 = vld [vmem:[%s2865_s1 + $0x214] ss:$20 sps:$4 sm:$0xff]   ;;  %v2010_v5 = vld [vmem:[%s2865_s1 + $0x210] ss:$20 sps:$4 sm:$0xff]  }
  0x17   :  { %592 = vmatpush1.bf16.msra.mxu0 %v1925_v11  ;;  %v1996_v3 = vld [vmem:[%s2865_s1 + $0x60] ss:$20 sps:$4 sm:$0xff]   ;;  %v1999_v4 = vld [vmem:[%s2865_s1 + $0x1c8] ss:$20 sps:$4 sm:$0xff]   ;;  %v2004_v8 = vld [vmem:[%s2865_s1 + $0x1f0] ss:$20 sps:$4 sm:$0xff]  }
  0x18   :  { %593 = vmatprep.subr.bf16.mxu0 %v1926_v12  ;;  %631 = vmatpush1.bf16.msra.mxu1 %v1972_v32  ;;  %v2012_v6 = vld [vmem:[%s2865_s1 + $0x23c] ss:$20 sps:$4 sm:$0xff]   ;;  %v2015_v9 = vld [vmem:[%s2865_s1 + $0x238] ss:$20 sps:$4 sm:$0xff]   ;;  %v2014_v16 = vld [vmem:[%s2865_s1 + $0x240] ss:$20 sps:$4 sm:$0xff]  }
  0x19   :  { %632 = vmatprep.subr.bf16.mxu1 %v1973_v33  ;;  %v2001_v7 = vld [vmem:[%s2865_s1 + $0x88] ss:$20 sps:$4 sm:$0xff]   ;;  %v2006_v10 = vld [vmem:[%s2865_s1 + $0xb0] ss:$20 sps:$4 sm:$0xff]   ;;  %v2009_v12 = vld [vmem:[%s2865_s1 + $0x218] ss:$20 sps:$4 sm:$0xff]  }
  0x1a   :  { %v2017_v11 = vld [vmem:[%s2865_s1 + $0x264] ss:$20 sps:$4 sm:$0xff]   ;;  %v2022_v17 = vld [vmem:[%s2867_s3] ss:$8 sps:$4 sm:$0xff]   ;;  %v2033_v25 = vld [vmem:[%s2867_s3 + $0x34] ss:$8 sps:$4 sm:$0xff]  }
  0x1b   :  { %594 = vmatpush1.bf16.msra.mxu0 %v1928_v13  ;;  %v2020_v13 = vld [vmem:[%s2865_s1 + $0x260] ss:$20 sps:$4 sm:$0xff]   ;;  %v2024_v14 = vld [vmem:[%s2867_s3 + $0x4] ss:$8 sps:$4 sm:$0xff]   ;;  %v2019_v20 = vld [vmem:[%s2865_s1 + $0x268] ss:$20 sps:$4 sm:$0xff]  }
  0x1c   :  { %595 = vmatprep.subr.bf16.mxu0 %v1929_v15  ;;  %633 = vmatpush1.bf16.msra.mxu1 %v1975_v36  ;;  %v2011_v15 = vld [vmem:[%s2865_s1 + $0xd8] ss:$20 sps:$4 sm:$0xff]   ;;  %v2016_v19 = vld [vmem:[%s2865_s1 + $0x100] ss:$20 sps:$4 sm:$0xff]  }
  0x1d   :  { %634 = vmatprep.subr.bf16.mxu1 %v1976_v37  ;;  %v2025_v21 = vld [vmem:[%s2867_s3 + $0x10] ss:$8 sps:$4 sm:$0xff]   ;;  %v2028_v24 = vld [vmem:[%s2867_s3 + $0x20] ss:$8 sps:$4 sm:$0xff]   ;;  %v2039_v29 = vld [vmem:[%s2867_s3 + $0x54] ss:$8 sps:$4 sm:$0xff]  }
  0x1e   :  { %v2034_v28 = vld [vmem:[%s2867_s3 + $0x40] ss:$8 sps:$4 sm:$0xff]   ;;  %v2045_v33 = vld [vmem:[%s2867_s3 + $0x74] ss:$8 sps:$4 sm:$0xff]  }
  0x1f   :  { %596 = vmatpush1.bf16.msra.mxu0 %v1931_v22  ;;  %v2030_v22 = vld [vmem:[%s2867_s3 + $0x24] ss:$8 sps:$4 sm:$0xff]   ;;  %v2040_v32 = vld [vmem:[%s2867_s3 + $0x60] ss:$8 sps:$4 sm:$0xff]  }
  0x20   :  { %597 = vmatprep.subr.bf16.mxu0 %v1932_v23  ;;  %635 = vmatpush1.bf16.msra.mxu1 %v1978_v40  ;;  %v2021_v23 = vld [vmem:[%s2865_s1 + $0x128] ss:$20 sps:$4 sm:$0xff]  }
  0x21   :  { %636 = vmatprep.subr.bf16.mxu1 %v1979_v41 }
  0x23   :  { %598 = vmatpush1.bf16.msra.mxu0 %v1934_v26  ;;  %v2031_v26 = vld [vmem:[%s2867_s3 + $0x30] ss:$8 sps:$4 sm:$0xff]  }
  0x24   :  { %599 = vmatprep.subr.bf16.mxu0 %v1935_v27  ;;  %637 = vmatpush1.bf16.msra.mxu1 %v1981_v44  ;;  %v2036_v27 = vld [vmem:[%s2867_s3 + $0x44] ss:$8 sps:$4 sm:$0xff]  }
  0x25   :  { %638 = vmatprep.subr.bf16.mxu1 %v1982_v45 }
  0x27   :  { %600 = vmatpush1.bf16.msra.mxu0 %v1937_v30  ;;  %v2037_v30 = vld [vmem:[%s2867_s3 + $0x50] ss:$8 sps:$4 sm:$0xff]  }
  0x28   :  { %601 = vmatprep.subr.bf16.mxu0 %v1938_v31  ;;  %639 = vmatpush1.bf16.msra.mxu1 %v1985_v48  ;;  %v2042_v31 = vld [vmem:[%s2867_s3 + $0x64] ss:$8 sps:$4 sm:$0xff]  }
  0x29   :  { %640 = vmatprep.subr.bf16.mxu1 %v1987_v49 }
  0x2b   :  { %602 = vmatpush1.bf16.msra.mxu0 %v1940_v34 }
  0x2c   :  { %603 = vmatprep.subr.bf16.mxu0 %v1941_v35  ;;  %641 = vmatpush1.bf16.msra.mxu1 %v1990_v52 }
  0x2d   :  { %642 = vmatprep.subr.bf16.mxu1 %v1992_v53 }
  0x2f   :  { %604 = vmatpush1.bf16.msra.mxu0 %v1943_v38 }
  0x30   :  { %605 = vmatprep.subr.bf16.mxu0 %v1944_v39  ;;  %643 = vmatpush1.bf16.msra.mxu1 %v1995_v56 }
  0x31   :  { %644 = vmatprep.subr.bf16.mxu1 %v1997_v57 }
  0x33   :  { %606 = vmatpush1.bf16.msra.mxu0 %v1946_v42 }
  0x34   :  { %607 = vmatprep.subr.bf16.mxu0 %v1947_v43  ;;  %645 = vmatpush1.bf16.msra.mxu1 %v2000_v61 }
  0x35   :  { %646 = vmatprep.subr.bf16.mxu1 %v2002_v62 }
  0x37   :  { %608 = vmatpush1.bf16.msra.mxu0 %v1949_v46 }
  0x38   :  { %609 = vmatprep.subr.bf16.mxu0 %v1950_v47  ;;  %647 = vmatpush1.bf16.msra.mxu1 %v2005_v1 }
  0x39   :  { %648 = vmatprep.subr.bf16.mxu1 %v2007_v2 }
  0x3b   :  { %610 = vmatpush1.bf16.msra.mxu0 %v1952_v50 }
  0x3c   :  { %611 = vmatprep.subr.bf16.mxu0 %v1953_v51  ;;  %649 = vmatpush1.bf16.msra.mxu1 %v2010_v5 }
  0x3d   :  { %650 = vmatprep.subr.bf16.mxu1 %v2012_v6 }
  0x3f   :  { %612 = vmatpush1.bf16.msra.mxu0 %v1957_v54 }
  0x40   :  { %1823 = vmatprep.subr.bf16.mxu0 %v1984_v55  ;;  %651 = vmatpush1.bf16.msra.mxu1 %v2015_v9 }
  0x41   :  { %652 = vmatprep.subr.bf16.mxu1 %v2017_v11 }
  0x42   :  { %614 = vmatmul.mubr.bf16.vlgmr.msra.gmra.mrb[0].mxu0 %v2425_v58 }
  0x43   :  { %1824 = vmatpush3.bf16.msra.mxu0 %v1986_v59  ;;  %695 = vmatprep.mubr.bf16.mxu0 %v2302_v18  ;;  %v2027_v18 = vld [vmem:[%s2867_s3 + $0x14] ss:$8 sps:$4 sm:$0xff]  }
  0x44   :  { %1825 = vmatprep.subr.bf16.mxu0 %v1989_v60  ;;  %653 = vmatpush1.bf16.msra.mxu1 %v2020_v13 }
  0x45   :  { %1205 = vmatprep.subr.bf16.mxu1 %v2024_v14 }
  0x47   :  { %1826 = vmatpush3.bf16.msra.mxu0 %v1991_v63  ;;  %655 = vmatmul.mubr.bf16.vlgmr.msra.gmra.mrb[0].mxu1 %v2425_v58 }
  0x48   :  { %1827 = vmatprep.subr.bf16.mxu0 %v1994_v0  ;;  %1206 = vmatpush1.bf16.msra.mxu1 %v2022_v17 }
  0x49   :  { %1207 = vmatprep.subr.bf16.mxu1 %v2027_v18 }
  0x4b   :  { %1828 = vmatpush3.bf16.msra.mxu0 %v1996_v3 }
  0x4c   :  { %1829 = vmatprep.subr.bf16.mxu0 %v1999_v4  ;;  %1208 = vmatpush1.bf16.msra.mxu1 %v2025_v21 }
  0x4d   :  { %1209 = vmatprep.subr.bf16.mxu1 %v2030_v22 }
  0x4f   :  { %1830 = vmatpush3.bf16.msra.mxu0 %v2001_v7 }
  0x50   :  { %1831 = vmatprep.subr.bf16.mxu0 %v2004_v8  ;;  %1210 = vmatpush1.bf16.msra.mxu1 %v2028_v24 }
  0x51   :  { %1211 = vmatprep.subr.bf16.mxu1 %v2033_v25 }
  0x53   :  { %1832 = vmatpush3.bf16.msra.mxu0 %v2006_v10 }
  0x54   :  { %1833 = vmatprep.subr.bf16.mxu0 %v2009_v12  ;;  %1212 = vmatpush1.bf16.msra.mxu1 %v2031_v26 }
  0x55   :  { %1213 = vmatprep.subr.bf16.mxu1 %v2036_v27 }
  0x57   :  { %1834 = vmatpush3.bf16.msra.mxu0 %v2011_v15 }
  0x58   :  { %1835 = vmatprep.subr.bf16.mxu0 %v2014_v16  ;;  %1214 = vmatpush1.bf16.msra.mxu1 %v2034_v28 }
  0x59   :  { %1215 = vmatprep.subr.bf16.mxu1 %v2039_v29 }
  0x5b   :  { %1836 = vmatpush3.bf16.msra.mxu0 %v2016_v19 }
  0x5c   :  { %1837 = vmatprep.subr.bf16.mxu0 %v2019_v20  ;;  %1216 = vmatpush1.bf16.msra.mxu1 %v2037_v30 }
  0x5d   :  { %1217 = vmatprep.subr.bf16.mxu1 %v2042_v31 }
  0x5f   :  { %1838 = vmatpush3.bf16.msra.mxu0 %v2021_v23 }
  0x62   :  { %696 = vmatmul.mubr.bf16.vlgmr.msra.gmra.mrb[4].mxu0 %v2425_v58 }
  0x63   :  { %14 = vsyncpa [#allocation3], 0  ;;  %1218 = vmatpush1.bf16.msra.mxu1 %v2040_v32  ;;  %v2043_v34 = vld [vmem:[%s2867_s3 + $0x70] ss:$8 sps:$4 sm:$0xff]   ;;  %v2048_v35 = vld [vmem:[%s2867_s3 + $0x84] ss:$8 sps:$4 sm:$0xff]   ;;  %v133_v6 = vlaneseq }
  0x64   :  { %1219 = vmatprep.subr.bf16.mxu1 %v2045_v33  ;;  %v2046_v36 = vld [vmem:[%s2867_s3 + $0x80] ss:$8 sps:$4 sm:$0xff]   ;;  %v2051_v37 = vld [vmem:[%s2867_s3 + $0x94] ss:$8 sps:$4 sm:$0xff]   ;;  %v2049_v38 = vld [vmem:[%s2867_s3 + $0x90] ss:$8 sps:$4 sm:$0xff]  }
  0x65   :  { %v2054_v39 = vld [vmem:[%s2867_s3 + $0xa4] ss:$8 sps:$4 sm:$0xff]   ;;  %v2052_v40 = vld [vmem:[%s2867_s3 + $0xa0] ss:$8 sps:$4 sm:$0xff]   ;;  %v2057_v41 = vld [vmem:[%s2867_s3 + $0xb4] ss:$8 sps:$4 sm:$0xff]  }
  0x66   :  { %v2055_v42 = vld [vmem:[%s2867_s3 + $0xb0] ss:$8 sps:$4 sm:$0xff]   ;;  %v2060_v43 = vld [vmem:[%s2867_s3 + $0xc4] ss:$8 sps:$4 sm:$0xff]   ;;  %v2058_v44 = vld [vmem:[%s2867_s3 + $0xc0] ss:$8 sps:$4 sm:$0xff]  }
  0x67   :  { %1220 = vmatpush1.bf16.msra.mxu1 %v2043_v34  ;;  %v2063_v45 = vld [vmem:[%s2867_s3 + $0xd4] ss:$8 sps:$4 sm:$0xff]   ;;  %v2061_v46 = vld [vmem:[%s2867_s3 + $0xd0] ss:$8 sps:$4 sm:$0xff]   ;;  %v2066_v47 = vld [vmem:[%s2867_s3 + $0xe4] ss:$8 sps:$4 sm:$0xff]  }
  0x68   :  { %1221 = vmatprep.subr.bf16.mxu1 %v2048_v35  ;;  %v2064_v48 = vld [vmem:[%s2867_s3 + $0xe0] ss:$8 sps:$4 sm:$0xff]   ;;  %v2069_v49 = vld [vmem:[%s2867_s3 + $0xf4] ss:$8 sps:$4 sm:$0xff]   ;;  %v2067_v50 = vld [vmem:[%s2867_s3 + $0xf0] ss:$8 sps:$4 sm:$0xff]  }
  0x69   :  { %v2072_v51 = vld [vmem:[%s2867_s3 + $0x104] ss:$8 sps:$4 sm:$0xff]   ;;  %v2094_v53 = vld [vmem:[%s2867_s3 + $0x200] ss:$8 sps:$4 sm:$0xff]   ;;  %v2102_v54 = vld [vmem:[%s2867_s3 + $0x214] ss:$8 sps:$4 sm:$0xff]  }
  0x6a   :  { %v2096_v52 = vld [vmem:[%s2867_s3 + $0x204] ss:$8 sps:$4 sm:$0xff]   ;;  %v2100_v55 = vld [vmem:[%s2867_s3 + $0x210] ss:$8 sps:$4 sm:$0xff]   ;;  %v2106_v57 = vld [vmem:[%s2867_s3 + $0x220] ss:$8 sps:$4 sm:$0xff]  }
  0x6b   :  { %1222 = vmatpush1.bf16.msra.mxu1 %v2046_v36  ;;  %1287 = vmatprep.subr.bf16.mxu0 %v2096_v52  ;;  %v2108_v56 = vld [vmem:[%s2867_s3 + $0x224] ss:$8 sps:$4 sm:$0xff]   ;;  %v2114_v58 = vld [vmem:[%s2867_s3 + $0x234] ss:$8 sps:$4 sm:$0xff]   ;;  %v2112_v59 = vld [vmem:[%s2867_s3 + $0x230] ss:$8 sps:$4 sm:$0xff]  }
  0x6c   :  { %1223 = vmatprep.subr.bf16.mxu1 %v2051_v37  ;;  %1288 = vmatpush1.bf16.msra.mxu0 %v2094_v53  ;;  %v2120_v60 = vld [vmem:[%s2867_s3 + $0x244] ss:$8 sps:$4 sm:$0xff]   ;;  %v2118_v61 = vld [vmem:[%s2867_s3 + $0x240] ss:$8 sps:$4 sm:$0xff]   ;;  %v2126_v62 = vld [vmem:[%s2867_s3 + $0x254] ss:$8 sps:$4 sm:$0xff]  }
  0x6d   :  { %1289 = vmatprep.subr.bf16.mxu0 %v2102_v54  ;;  %v2124_v63 = vld [vmem:[%s2867_s3 + $0x250] ss:$8 sps:$4 sm:$0xff]   ;;  %v2132_v0 = vld [vmem:[%s2867_s3 + $0x264] ss:$8 sps:$4 sm:$0xff]   ;;  %v2130_v1 = vld [vmem:[%s2867_s3 + $0x260] ss:$8 sps:$4 sm:$0xff]  }
  0x6e   :  { %v2138_v2 = vld [vmem:[%s2867_s3 + $0x274] ss:$8 sps:$4 sm:$0xff]   ;;  %v2136_v3 = vld [vmem:[%s2867_s3 + $0x270] ss:$8 sps:$4 sm:$0xff]   ;;  %v2190_v4 = vmov 0   ;;  %v2142_v5 = vld [vmem:[%s2869_s5 + $0x40] sm:$0xff]  }
  0x6f   :  { %1224 = vmatpush1.bf16.msra.mxu1 %v2049_v38  ;;  %1319 = vmatprep.mubr.bf16.mxu0 %v2190_v4  ;;  %v2653_v7 = vshrl.u32 %v133_v6, 7  ;;  %v2659_v9 = vld [vmem:[%s2866_s2] sm:$0x1f]  ;;  %v2075_v24 = vld [vmem:[%s2867_s3 + $0x114] ss:$8 sps:$4 sm:$0xff]   ;;  %vm2192_vm0 = vmmov 0  }
  0x70   :  { %1225 = vmatprep.subr.bf16.mxu1 %v2054_v39  ;;  %1290 = vmatpush1.bf16.msra.mxu0 %v2100_v55  ;;  %v2070_v22 = vld [vmem:[%s2867_s3 + $0x100] ss:$8 sps:$4 sm:$0xff]   ;;  %v2073_v25 = vld [vmem:[%s2867_s3 + $0x110] ss:$8 sps:$4 sm:$0xff]   ;;  %v2078_v26 = vld [vmem:[%s2867_s3 + $0x124] ss:$8 sps:$4 sm:$0xff]  }
  0x71   :  { %1291 = vmatprep.subr.bf16.mxu0 %v2108_v56  ;;  %v135_v8 = vsub.s32 0, %v2653_v7  ;;  %v139_v10 = vsub.s32 1, %v2653_v7  ;;  %v2076_v27 = vld [vmem:[%s2867_s3 + $0x120] ss:$8 sps:$4 sm:$0xff]   ;;  %v2081_v28 = vld [vmem:[%s2867_s3 + $0x134] ss:$8 sps:$4 sm:$0xff]  }
  0x72   :  { %v147_v29 = vsub.s32 3, %v2653_v7  ;;  %v2079_v30 = vld [vmem:[%s2867_s3 + $0x130] ss:$8 sps:$4 sm:$0xff]   ;;  %v2084_v31 = vld [vmem:[%s2867_s3 + $0x144] ss:$8 sps:$4 sm:$0xff]  }
  0x73   :  { %1226 = vmatpush1.bf16.msra.mxu1 %v2052_v40  ;;  %v136_v11 = vrot.slane %v2659_v9, %v135_v8  ;;  %v140_v12 = vrot.slane %v2659_v9, %v139_v10  ;;  %v2082_v34 = vld [vmem:[%s2867_s3 + $0x140] ss:$8 sps:$4 sm:$0xff]   ;;  %v2087_v36 = vld [vmem:[%s2867_s3 + $0x154] ss:$8 sps:$4 sm:$0xff]   ;;  %v2099_v53 = vld [vmem:[%s2867_s3 + $0x184] ss:$8 sps:$4 sm:$0xff]  }
  0x74   :  { %1227 = vmatprep.subr.bf16.mxu1 %v2057_v41  ;;  %1292 = vmatpush1.bf16.msra.mxu0 %v2106_v57  ;;  %v148_v32 = vrot.slane %v2659_v9, %v147_v29  ;;  %v2085_v41 = vld [vmem:[%s2867_s3 + $0x150] ss:$8 sps:$4 sm:$0xff]   ;;  %v2097_v56 = vld [vmem:[%s2867_s3 + $0x180] ss:$8 sps:$4 sm:$0xff]  }
  0x75   :  { %1293 = vmatprep.subr.bf16.mxu0 %v2114_v58  ;;  %v2105_v58 = vld [vmem:[%s2867_s3 + $0x194] ss:$8 sps:$4 sm:$0xff]   ;;  %v2115_v6 = vld [vmem:[%s2867_s3 + $0x1b0] ss:$8 sps:$4 sm:$0xff]  }
  0x76   :  { %v2147_v4 = vld [vmem:[%s2869_s5 + $0x10] sm:$0xff]  }
  0x77   :  { %1228 = vmatpush1.bf16.msra.mxu1 %v2055_v42  ;;  %v2090_v42 = vld [vmem:[%s2867_s3 + $0x164] ss:$8 sps:$4 sm:$0xff]   ;;  %v2155_v29 = vld [vmem:[%s2869_s5 + $0x30] sm:$0xff]  }
  0x78   :  { %1229 = vmatprep.subr.bf16.mxu1 %v2060_v43  ;;  %1294 = vmatpush1.bf16.msra.mxu0 %v2112_v59  ;;  %v2143_v59 = vld [vmem:[%s2869_s5] sm:$0xff]  }
  0x79   :  { %1295 = vmatprep.subr.bf16.mxu0 %v2120_v60 }
  0x7b   :  { %1230 = vmatpush1.bf16.msra.mxu1 %v2058_v44  ;;  %v151_v44 = vsub.s32 4, %v2653_v7 }
  0x7c   :  { %1231 = vmatprep.subr.bf16.mxu1 %v2063_v45  ;;  %1296 = vmatpush1.bf16.msra.mxu0 %v2118_v61  ;;  %v2088_v45 = vld [vmem:[%s2867_s3 + $0x160] ss:$8 sps:$4 sm:$0xff]  }
  0x7d   :  { %1297 = vmatprep.subr.bf16.mxu0 %v2126_v62  ;;  %v2144_v61 = vld [vmem:[%s2869_s5 + $0x48] sm:$0xff]   ;;  %v2103_v62 = vld [vmem:[%s2867_s3 + $0x190] ss:$8 sps:$4 sm:$0xff]  }
  0x7f   :  { %1232 = vmatpush1.bf16.msra.mxu1 %v2061_v46  ;;  %v2093_v46 = vld [vmem:[%s2867_s3 + $0x174] ss:$8 sps:$4 sm:$0xff]  }
  0x80   :  { %1233 = vmatprep.subr.bf16.mxu1 %v2066_v47  ;;  %1298 = vmatpush1.bf16.msra.mxu0 %v2124_v63  ;;  %v2111_v63 = vld [vmem:[%s2867_s3 + $0x1a4] ss:$8 sps:$4 sm:$0xff]  }
  0x81   :  { %1299 = vmatprep.subr.bf16.mxu0 %v2132_v0  ;;  %v2145_v0 = vld [vmem:[%s2869_s5 + $0x8] sm:$0xff]  }
  0x83   :  { %1234 = vmatpush1.bf16.msra.mxu1 %v2064_v48  ;;  %v152_v48 = vrot.slane %v2659_v9, %v151_v44 }
  0x84   :  { %1235 = vmatprep.subr.bf16.mxu1 %v2069_v49  ;;  %1300 = vmatpush1.bf16.msra.mxu0 %v2130_v1  ;;  %v2146_v1 = vld [vmem:[%s2869_s5 + $0x50] sm:$0xff]  }
  0x85   :  { %1301 = vmatprep.subr.bf16.mxu0 %v2138_v2  ;;  %v2109_v2 = vld [vmem:[%s2867_s3 + $0x1a0] ss:$8 sps:$4 sm:$0xff]  }
  0x87   :  { %1236 = vmatpush1.bf16.msra.mxu1 %v2067_v50  ;;  %v2091_v50 = vld [vmem:[%s2867_s3 + $0x170] ss:$8 sps:$4 sm:$0xff]  }
  0x88   :  { %1246 = vmatprep.subr.bf16.mxu1 %v2072_v51  ;;  %1302 = vmatpush1.bf16.msra.mxu0 %v2136_v3  ;;  %v2117_v3 = vld [vmem:[%s2867_s3 + $0x1b4] ss:$8 sps:$4 sm:$0xff]  }
  0x89   :  { %1845 = vmatprep.subr.bf16.mxu0 %v2142_v5  ;;  %v2148_v5 = vld [vmem:[%s2869_s5 + $0x58] sm:$0xff]  }
 0x115   :  { %v615_v13 = vpop.f32.mrb[0].mxu0 }
 0x116   :  { %v616_v14 = vadd.f32 %v615_v13, %v136_v11  ;;  %v617_v15 = vpop.f32.mrb[1].mxu0  ;;  %v2123_v11 = vld [vmem:[%s2867_s3 + $0x1c4] ss:$8 sps:$4 sm:$0xff]  }
 0x117   :  { %v618_v16 = vadd.f32 %v617_v15, %v140_v12  ;;  %v619_v17 = vpop.f32.mrb[2].mxu0  ;;  %v2149_v12 = vld [vmem:[%s2869_s5 + $0x18] sm:$0xff]   ;;  %v2150_v13 = vld [vmem:[%s2869_s5 + $0x60] sm:$0xff]   ;;  %v143_v15 = vsub.s32 2, %v2653_v7  ;;  %v2159_v7 = vld [vmem:[%s2871_s7 + $0x8] sm:$0xff]  }
 0x118   :  { %v703_v18 = vmax.f32 %v616_v14, 0.0  ;;  %v620_v19 = vpop.f32.mrb[3].mxu0  ;;  %v2121_v14 = vld [vmem:[%s2867_s3 + $0x1c0] ss:$8 sps:$4 sm:$0xff]  }
 0x119   :  { %v704_v20 = vmax.f32 %v618_v16, 0.0  ;;  %v2129_v16 = vld [vmem:[%s2867_s3 + $0x1d4] ss:$8 sps:$4 sm:$0xff]   ;;  %v2151_v17 = vld [vmem:[%s2869_s5 + $0x20] sm:$0xff]   ;;  %v144_v19 = vrot.slane %v2659_v9, %v143_v15  ;;  %v2139_v9 = vld [vmem:[%s2867_s3 + $0x1f0] ss:$8 sps:$4 sm:$0xff]  }
 0x11a   :  { %v708_v23 = vpack.c.bf16 %v703_v18, %v703_v18  ;;  %v2694_v33 = vpop.f32.mrb[0].mxu1  ;;  %v2127_v18 = vld [vmem:[%s2867_s3 + $0x1d0] ss:$8 sps:$4 sm:$0xff]  }
 0x11b   :  { %v709_v21 = vpack.c.bf16 %v704_v20, %v704_v20  ;;  %v658_v35 = vpop.f32.mrb[1].mxu1  ;;  %v2135_v20 = vld [vmem:[%s2867_s3 + $0x1e4] ss:$8 sps:$4 sm:$0xff]  }
 0x11c   :  { %v659_v37 = vadd.f32 %v658_v35, %v148_v32  ;;  %v660_v38 = vpop.f32.mrb[2].mxu1  ;;  %v2191_v32 = vmov 0.0  }
 0x11d   :  { %1237 = vmatprep.mubr.bf16.mxu1 %v709_v21  ;;  %v661_v39 = vpop.f32.mrb[3].mxu1  ;;  %v2133_v21 = vld [vmem:[%s2867_s3 + $0x1e0] ss:$8 sps:$4 sm:$0xff]  }
 0x11e   :  { %1238 = vmatmul.mubr.bf16.vlgmr.msra.gmra.mrb[4].mxu1 %v708_v23  ;;  %v706_v40 = vmax.f32 %v659_v37, 0.0  ;;  %v2141_v23 = vld [vmem:[%s2867_s3 + $0x1f4] ss:$8 sps:$4 sm:$0xff]   ;;  %v793_v37 = vld [vmem:[%s2868_s4] sm:$0x3] }
 0x11f   :  { %1247 = vmatpush1.bf16.msra.mxu1 %v2070_v22  ;;  %v657_v22 = vadd.f32 %v2694_v33, %v144_v19  ;;  %v798_v38 = vrot.slane %v793_v37, %v135_v8  ;;  %v802_v39 = vrot.slane %v793_v37, %v139_v10  ;;  %v2160_v8 = vld [vmem:[%s2871_s7 + $0x10] sm:$0xff]   ;;  %v2161_v10 = vld [vmem:[%s2871_s7 + $0x18] sm:$0xff]  }
 0x120   :  { %1248 = vmatprep.subr.bf16.mxu1 %v2075_v24  ;;  %v711_v43 = vpack.c.bf16 %v706_v40, %v706_v40 }
 0x121   :  { %v705_v24 = vmax.f32 %v657_v22, 0.0 }
 0x122   :  { %1278 = vmatprep.mubr.bf16.mxu1 %v711_v43 }
 0x123   :  { %1249 = vmatpush1.bf16.msra.mxu1 %v2073_v25  ;;  %v710_v25 = vpack.c.bf16 %v705_v24, %v705_v24 }
 0x124   :  { %1250 = vmatprep.subr.bf16.mxu1 %v2078_v26  ;;  %v2152_v26 = vld [vmem:[%s2869_s5 + $0x68] sm:$0xff]  }
 0x127   :  { %1251 = vmatpush1.bf16.msra.mxu1 %v2076_v27  ;;  %v2153_v27 = vld [vmem:[%s2869_s5 + $0x28] sm:$0xff]  }
 0x128   :  { %1252 = vmatprep.subr.bf16.mxu1 %v2081_v28  ;;  %v2154_v28 = vld [vmem:[%s2869_s5 + $0x70] sm:$0xff]  }
 0x12b   :  { %1253 = vmatpush1.bf16.msra.mxu1 %v2079_v30  ;;  %v2156_v30 = vld [vmem:[%s2869_s5 + $0x78] sm:$0xff]  }
 0x12c   :  { %1254 = vmatprep.subr.bf16.mxu1 %v2084_v31  ;;  %v2157_v31 = vld [vmem:[%s2869_s5 + $0x38] sm:$0xff]  }
 0x12f   :  { %1255 = vmatpush1.bf16.msra.mxu1 %v2082_v34 }
 0x130   :  { %1256 = vmatprep.subr.bf16.mxu1 %v2087_v36 }
 0x133   :  { %1257 = vmatpush1.bf16.msra.mxu1 %v2085_v41 }
 0x134   :  { %1258 = vmatprep.subr.bf16.mxu1 %v2090_v42 }
 0x135   :  { %v1839_v47 = vpop.f32.mrb[4].mxu0 }
 0x136   :  { %v1840_v49 = vpop.f32.mrb[5].mxu0 }
 0x137   :  { %1259 = vmatpush1.bf16.msra.mxu1 %v2088_v45  ;;  %v1841_v51 = vadd.f32 %v1840_v49, %v1839_v47  ;;  %v1842_v52 = vpop.f32.mrb[6].mxu0 }
 0x138   :  { %1260 = vmatprep.subr.bf16.mxu1 %v2093_v46  ;;  %v1843_v54 = vpop.f32.mrb[7].mxu0 }
 0x139   :  { %v698_v55 = vadd.f32 %v1841_v51, %v152_v48  ;;  %v2158_v51 = vld [vmem:[%s2871_s7] sm:$0xff]   ;;  %v2163_v54 = vld [vmem:[%s2871_s7 + $0x28] sm:$0xff]  }
 0x13b   :  { %1261 = vmatpush1.bf16.msra.mxu1 %v2091_v50  ;;  %v707_v57 = vmax.f32 %v698_v55, 0.0  ;;  %v2164_v55 = vld [vmem:[%s2871_s7 + $0x30] sm:$0xff]  }
 0x13c   :  { %1262 = vmatprep.subr.bf16.mxu1 %v2099_v53  ;;  %v2162_v53 = vld [vmem:[%s2871_s7 + $0x20] sm:$0xff]  }
 0x13d   :  { %v712_v60 = vpack.c.bf16 %v707_v57, %v707_v57 }
 0x13f   :  { %1263 = vmatpush1.bf16.msra.mxu1 %v2097_v56  ;;  %1320 = vmatmul.mubr.bf16.vlgmr.msra.gmra.mrb[8].mxu0 %v712_v60  ;;  %v2165_v56 = vld [vmem:[%s2871_s7 + $0x38] sm:$0xff]   ;;  %s2193_s7 = smov [#allocation2]  }
 0x140   :  { %1264 = vmatprep.subr.bf16.mxu1 %v2105_v58  ;;  %1846 = vmatpush3.bf16.msra.mxu0 %v2143_v59  ;;  %v1797_v58 = vld [vmem:[%s2870_s6] ss:$0 sm:$0xff]  ;;  %s1627_s18 = sshll.u32 %s2193_s7, 4  ;;  %s1628_s18 = int_to_ptr.vmem [resolvable:$true] %s1627_s18 }
 0x141   :  { %1847 = vmatprep.subr.bf16.mxu0 %v2144_v61  ;;  %s2166_s6 = scalar_lea.vmem %s1628_s18, 128  ;;  %p2171_p1 = scmp.lt.s32.totalorder %s1628_s18, %s1628_s18 }
 0x142   :  { %p2167_p0 = scmp.ne.s32.totalorder %s1628_s18, %s2166_s6  ;;  %p2172_p2 = scmp.lt.s32.totalorder %s2166_s6, %s2166_s6 }
 0x143   :  { %1265 = vmatpush1.bf16.msra.mxu1 %v2103_v62 }
 0x144   :  { %1266 = vmatprep.subr.bf16.mxu1 %v2111_v63  ;;  %1848 = vmatpush3.bf16.msra.mxu0 %v2145_v0  ;;  %p2173_p3 = por %p2172_p2, %p2171_p1 }
 0x145   :  { %1849 = vmatprep.subr.bf16.mxu0 %v2146_v1 }
 0x146   :  { %p2174_p4 = pnand %p2173_p3, %p2167_p0 }
 0x147   :  { %1267 = vmatpush1.bf16.msra.mxu1 %v2109_v2  ;;  %v1814_v2 = vld [vmem:[%s2872_s8] ss:$0 sm:$0xff] }
 0x148   :  { %1268 = vmatprep.subr.bf16.mxu1 %v2117_v3  ;;  %1850 = vmatpush3.bf16.msra.mxu0 %v2147_v4 }
 0x149   :  { %1851 = vmatprep.subr.bf16.mxu0 %v2148_v5 }
 0x14b   :  { %1269 = vmatpush1.bf16.msra.mxu1 %v2115_v6 }
 0x14c   :  { %1270 = vmatprep.subr.bf16.mxu1 %v2123_v11  ;;  %1852 = vmatpush3.bf16.msra.mxu0 %v2149_v12 }
 0x14d   :  { %1853 = vmatprep.subr.bf16.mxu0 %v2150_v13 }
 0x14f   :  { %1271 = vmatpush1.bf16.msra.mxu1 %v2121_v14 }
 0x150   :  { %1272 = vmatprep.subr.bf16.mxu1 %v2129_v16  ;;  %1854 = vmatpush3.bf16.msra.mxu0 %v2151_v17 }
 0x151   :  { %1855 = vmatprep.subr.bf16.mxu0 %v2152_v26 }
 0x153   :  { %1273 = vmatpush1.bf16.msra.mxu1 %v2127_v18 }
 0x154   :  { %1274 = vmatprep.subr.bf16.mxu1 %v2135_v20  ;;  %1856 = vmatpush3.bf16.msra.mxu0 %v2153_v27 }
 0x155   :  { %1857 = vmatprep.subr.bf16.mxu0 %v2154_v28 }
 0x157   :  { %1275 = vmatpush1.bf16.msra.mxu1 %v2133_v21 }
 0x158   :  { %1276 = vmatprep.subr.bf16.mxu1 %v2141_v23  ;;  %1858 = vmatpush3.bf16.msra.mxu0 %v2155_v29 }
 0x159   :  { %1859 = vmatprep.subr.bf16.mxu0 %v2156_v30 }
 0x15b   :  { %1277 = vmatpush1.bf16.msra.mxu1 %v2139_v9 }
 0x15c   :  { %1860 = vmatpush3.bf16.msra.mxu0 %v2157_v31 }
 0x15d   :  { %1876 = vmatprep.subr.bf16.mxu0 %v2191_v32 }
 0x15e   :  { %1279 = vmatmul.mubr.bf16.vlgmr.msra.gmra.mrb[4].mxu1 %v710_v25 }
 0x212   :  { %v1321_v33 = vpop.f32.mrb[8].mxu0 }
 0x213   :  { %v1323_v34 = vpop.f32.mrb[9].mxu0 }
 0x214   :  { %v1325_v35 = vpop.f32.mrb[10].mxu0 }
 0x215   :  { %v1326_v36 = vpop.f32.mrb[11].mxu0 }
 0x231   :  { %v1280_v40 = vpop.f32.mrb[4].mxu1 }
 0x232   :  { %v1896_v41 = vadd.f32 %v1280_v40, %v798_v38  ;;  %v1282_v42 = vpop.f32.mrb[5].mxu1 }
 0x233   :  { %v1898_v43 = vadd.f32 %v1282_v42, %v802_v39  ;;  %v1284_v44 = vpop.f32.mrb[6].mxu1 }
 0x234   :  { %v1897_v45 = vadd.f32 %v1896_v41, %v1321_v33  ;;  %v1285_v46 = vpop.f32.mrb[7].mxu1 }
 0x235   :  { %v1899_v47 = vadd.f32 %v1898_v43, %v1323_v34 }
 0x236   :  { %v1328_v48 = vmax.f32 %v1897_v45, 0.0 }
 0x237   :  { %v1329_v49 = vmax.f32 %v1899_v47, 0.0 }
 0x238   :  { %v1330_v52 = vpack.c.bf16 %v1328_v48, %v1328_v48 }
 0x239   :  { %v1331_v50 = vpack.c.bf16 %v1329_v49, %v1329_v49 }
 0x23b   :  { %1499 = vmatprep.mubr.bf16.mxu0 %v1331_v50 }
 0x23c   :  { %1500 = vmatmul.mubr.bf16.vlgmr.msra.gmra.mrb[12].mxu0 %v1330_v52 }
 0x23d   :  { %1877 = vmatpush3.bf16.msra.mxu0 %v2158_v51  ;;  %1892 = vmatprep.mubr.msk.bf16.mxu0 %vm2192_vm0, %v2191_v32 }
 0x23e   :  { %1878 = vmatprep.subr.bf16.mxu0 %v2191_v32 }
 0x241   :  { %1879 = vmatpush3.bf16.msra.mxu0 %v2159_v7 }
 0x242   :  { %1880 = vmatprep.subr.bf16.mxu0 %v2191_v32 }
 0x245   :  { %1881 = vmatpush3.bf16.msra.mxu0 %v2160_v8 }
 0x246   :  { %1882 = vmatprep.subr.bf16.mxu0 %v2191_v32 }
 0x249   :  { %1883 = vmatpush3.bf16.msra.mxu0 %v2161_v10 }
 0x24a   :  { %1884 = vmatprep.subr.bf16.mxu0 %v2191_v32 }
 0x24d   :  { %1885 = vmatpush3.bf16.msra.mxu0 %v2162_v53 }
 0x24e   :  { %1886 = vmatprep.subr.bf16.mxu0 %v2191_v32 }
 0x251   :  { %1887 = vmatpush3.bf16.msra.mxu0 %v2163_v54 }
 0x252   :  { %1888 = vmatprep.subr.bf16.mxu0 %v2191_v32 }
 0x255   :  { %1889 = vmatpush3.bf16.msra.mxu0 %v2164_v55 }
 0x256   :  { %1890 = vmatprep.subr.bf16.mxu0 %v2191_v32 }
 0x259   :  { %1891 = vmatpush3.bf16.msra.mxu0 %v2165_v56 }
 0x30f   :  { %v1861_v57 = vpop.f32.mrb[12].mxu0 }
 0x310   :  { %v1862_v59 = vpop.f32.mrb[13].mxu0 }
 0x311   :  { %v1863_v60 = vadd.f32 %v1862_v59, %v1861_v57  ;;  %v1864_v61 = vpop.f32.mrb[14].mxu0 }
 0x312   :  { %v1865_v62 = vpop.f32.mrb[15].mxu0 }
 0x313   :  { %v1502_v63 = vadd.f32 %v1863_v60, %v1797_v58 }
 0x315   :  { %v1507_v0 = vmax.f32 %v1502_v63, 0.0 }
 0x317   :  { %v1508_v1 = vpack.c.bf16 %v1507_v0, %v1507_v0 }
 0x319   :  { %1893 = vmatmul.mubr.bf16.vlgmr.msra.gmra.mrb[16].mxu0 %v1508_v1 }
 0x3ec   :  { %v1614_v3 = vpop.f32.mrb[16].mxu0 }
 0x3ed   :  { %v1615_v4 = vadd.f32 %v1814_v2, %v1614_v3  ;;  %v1894_v5 = vpop.f32.mrb[17].mxu0 }
 0x3ee   :  { %v1617_v6 = vpop.f32.mrb[18].mxu0 }
 0x3ef   :  { %1620 = vst [vmem:[#allocation2] sm:$0xff] %v1615_v4  ;;  %v1895_v11 = vpop.f32.mrb[19].mxu0 }
 0x3f0   :  { %2177 = shalt.err (!%p2174_p4)
}
 0x3f1   :  { %s2178_s8 = scalar_lea.hbm %s2873_s9, 128 }
 0x3f2   :  { %p2179_p5 = scmp.ne.s32.totalorder %s2873_s9, %s2178_s8  ;;  %p2182_p6 = scmp.lt.u32.totalorder %s2178_s8, %s2873_s9 }
 0x3f4   :  { %p2184_p7 = pnand %p2182_p6, %p2179_p5 }
 0x3f6   :  { %2187 = shalt.err (!%p2184_p7)
}
 0x3f7   :  { %1630 = dma.vmem_to_hbm [thread:$0]  %s1628_s18, 128, %s2873_s9, [#allocation3]  }
 0x3f8   :  { %2188 = dma.done.wait [#allocation3], 128  }
 0x3f9   :  { %2189 = vsyncadd [#allocation3], 4294967168 }
 0x3fa   :  { %1634 = vsyncpa [#allocation3], 1 }

</bundles_post_ra>
